<compile_context>
chip_gen: v7x
topology: tpu7x:2x2x1
jax: 0.10.0
libtpu: 0.0.40
codegen_flags: <defaults>
</compile_context>

<pallas_src>
import functools

import numpy as np
import jax
import jax.numpy as jnp
from jax import lax
from jax.experimental import pallas as pl
from jax.experimental.pallas import tpu as pltpu


def _build_fused_conv_matrix(w, li, lo, stride, channel_major_rows):
  """Trace-time fused conv operator for one layer.

  w: (cout, cin, 3) numpy weights (PyTorch OIH layout).
  Returns K of shape (li*cin, lo*cout) so that, for activations laid out as
  h[b, row] with row = ci*li + i (channel-major, layer 0 only, i.e. a plain
  reshape of the NCL input) or row = i*cin + ci (position-major, later layers),
  the full conv-with-padding-and-stride is  y[b, j*cout + co] = (h @ K)[b, ...].
  """
  cout, cin, _ = w.shape
  k = np.zeros((li * cin, lo * cout), np.float32)
  cols_base = np.arange(cout)
  for j in range(lo):
    for t in range(3):
      i = stride * j + t - 1
      if 0 <= i < li:
        if channel_major_rows:
          rows = i + li * np.arange(cin)       # row = ci*li + i
        else:
          rows = i * cin + np.arange(cin)      # row = i*cin + ci
        k[np.ix_(rows, j * cout + cols_base)] = w[:, :, t].T
  return k


def _cnn_fe_kernel(n_layers, x_ref, *refs):
  """Forward pass for one batch tile (tb batch rows on the sublane axis).

  x_ref          : (tb, Cin0*L)        lane-dense stacked input
  per layer l    : K_l  (li*Cin, lo*8) fused conv matrix (operand dtype)
                   b_l  (1, lo*8)      bias tiled over output positions (f32)
  wfc_ref        : (8, out_dim)        fc1 weight, transposed (operand dtype)
  bfc_ref        : (1, out_dim)        fc1 bias (f32)
  mask_ref       : (tb, 8)             precomputed inverted-dropout mask (f32)
  o_ref          : (tb, out_dim)       output features (f32)
  """
  layer_refs = refs[:2 * n_layers]
  wfc_ref, bfc_ref, mask_ref, o_ref = refs[2 * n_layers:]
  op_dtype = x_ref.dtype

  h = x_ref[...]
  for l in range(n_layers):
    k_ref = layer_refs[2 * l]
    b_ref = layer_refs[2 * l + 1]
    # One MXU push per layer: (tb, li*Cin) @ (li*Cin, lo*8), f32 accumulation.
    y = jnp.dot(h, k_ref[...], preferred_element_type=jnp.float32) + b_ref[...]
    if l < n_layers - 1:
      y = jnp.maximum(y, 0.0)                      # ReLU between convs only
    h = y.astype(op_dtype)

  # Encoder reduced the sequence to length 1 -> h is (tb, 8).
  h = (h.astype(jnp.float32) * mask_ref[...]).astype(op_dtype)   # inverted dropout
  o_ref[...] = (jnp.dot(h, wfc_ref[...], preferred_element_type=jnp.float32)
                + bfc_ref[...])


def cnn_fe_forward(x_ncl, conv_params, fc_params, dropout_mask,
                   num_batch_tiles=None, operand_dtype=jnp.float32):
  """x_ncl: (B, input_dim, L) float32 -- PyTorch NCL convention."""
  B, cin0, L = x_ncl.shape
  wfc, bfc = fc_params
  out_dim = wfc.shape[0]

  if num_batch_tiles is None:
    # Split across two TensorCores (v7x) only when each tile has >= 8 real
    # sublane rows; on single-TC v5e/v6e (or tiny B) the extra step is pure
    # per-step overhead (~0.35 us) with nothing to overlap.
    num_batch_tiles = 2 if (B >= 16 and B % 16 == 0) else 1
  nt = num_batch_tiles
  assert B % nt == 0
  tb = B // nt
  if nt > 1:
    assert tb % 8 == 0, "per-tile batch must be a multiple of 8 sublanes"

  # NCL -> (B, Cin*L): a plain reshape (no transpose); K_0 absorbs the
  # channel-major row ordering of this layout.
  x_flat = x_ncl.reshape(B, cin0 * L).astype(operand_dtype)

  strides = [1, 2, 2, 2, 2, 2]
  kernel_inputs = [x_flat]
  in_specs = [pl.BlockSpec((tb, cin0 * L), lambda i: (i, 0))]

  total_flops = 0
  li, cin = L, cin0
  for idx, ((w, bias), s) in enumerate(zip(conv_params, strides)):
    cout = w.shape[0]
    lo = (li + 2 - 3) // s + 1
    k_np = _build_fused_conv_matrix(np.asarray(w), li, lo, s,
                                    channel_major_rows=(idx == 0))
    k_mat = jnp.asarray(k_np, dtype=operand_dtype)              # (li*cin, lo*cout)
    b_row = jnp.tile(jnp.asarray(bias, jnp.float32), lo).reshape(1, -1)
    kernel_inputs += [k_mat, b_row]
    in_specs += [pl.BlockSpec(k_mat.shape, lambda i: (0, 0)),
                 pl.BlockSpec(b_row.shape, lambda i: (0, 0))]
    total_flops += 2 * B * (li * cin) * (lo * cout)
    li, cin = lo, cout
  assert li == 1, "encoder must reduce the sequence to length 1 for fc1(8, .)"

  wfck = jnp.asarray(wfc.T, operand_dtype)                      # (8, out_dim)
  bfck = jnp.asarray(bfc, jnp.float32).reshape(1, -1)           # (1, out_dim)
  mask = dropout_mask.astype(jnp.float32)                       # (B, 8)
  kernel_inputs += [wfck, bfck, mask]
  in_specs += [pl.BlockSpec(wfck.shape, lambda i: (0, 0)),
               pl.BlockSpec(bfck.shape, lambda i: (0, 0)),
               pl.BlockSpec((tb, 8), lambda i: (i, 0))]
  total_flops += 2 * B * 8 * out_dim

  bytes_accessed = (sum(int(np.prod(a.shape)) * a.dtype.itemsize
                        for a in kernel_inputs) + B * out_dim * 4)

  kernel = functools.partial(_cnn_fe_kernel, len(conv_params))

  return pl.pallas_call(
      kernel,
      out_shape=jax.ShapeDtypeStruct((B, out_dim), jnp.float32),
      grid_spec=pl.GridSpec(
          grid=(nt,),
          in_specs=in_specs,
          out_specs=pl.BlockSpec((tb, out_dim), lambda i: (i, 0))),
      compiler_params=pltpu.CompilerParams(
          dimension_semantics=("parallel",)),
      cost_estimate=pl.CostEstimate(flops=int(total_flops),
                                    transcendentals=0,
                                    bytes_accessed=int(bytes_accessed)),
  )(*kernel_inputs)


def make_params(key, input_dim, out_dim):
  """Deterministic synthetic parameters (shapes match the PyTorch module)."""
  keys = jax.random.split(key, 14)
  conv_params = []
  cin = input_dim
  for i in range(6):
    w = jax.random.normal(keys[2 * i], (8, cin, 3), jnp.float32) / jnp.sqrt(3.0 * cin)
    b = 0.1 * jax.random.normal(keys[2 * i + 1], (8,), jnp.float32)
    conv_params.append((w, b))
    cin = 8
  wfc = jax.random.normal(keys[12], (out_dim, 8), jnp.float32) / jnp.sqrt(8.0)
  bfc = 0.1 * jax.random.normal(keys[13], (out_dim,), jnp.float32)
  return conv_params, (wfc, bfc)


def reference_forward(x_ncl, conv_params, fc_params, dropout_mask):
  """Pure-JAX reference using lax.conv_general_dilated (NCL layout)."""
  strides = [1, 2, 2, 2, 2, 2]
  h = x_ncl
  for idx, ((w, b), s) in enumerate(zip(conv_params, strides)):
    h = lax.conv_general_dilated(
        h, w, window_strides=(s,), padding=[(1, 1)],
        dimension_numbers=('NCH', 'OIH', 'NCH'))
    h = h + b[None, :, None]
    if idx < 5:
      h = jnp.maximum(h, 0.0)
  h = h * dropout_mask[:, :, None]                         # F.dropout, same mask
  h = h.reshape(h.shape[0], -1)                            # (B, 8)
  wfc, bfc = fc_params
  return h @ wfc.T + bfc[None, :]


if __name__ == "__main__":
  # fc1 is Linear(8, out_dim), so the encoder must reduce the sequence to
  # length 1  ->  L = 32 (32 / 2^5 = 1).
  B, input_dim, L, out_dim = 2, 4, 32, 8

  key = jax.random.PRNGKey(0)
  kx, kp, km = jax.random.split(key, 3)

  x = jax.random.normal(kx, (B, input_dim, L), jnp.float32)
  conv_params, fc_params = make_params(kp, input_dim, out_dim)

  # TODO(synk): F.dropout(p=0.5, training=True) uses PyTorch's RNG stream; here
  # the keep-mask is drawn deterministically with jax.random and applied
  # in-kernel with the inverted-dropout x2 scale.
  keep = jax.random.bernoulli(km, p=0.5, shape=(B, 8))
  dropout_mask = keep.astype(jnp.float32) * 2.0

  ref = reference_forward(x, conv_params, fc_params, dropout_mask)

  # Exact (f32-operand) path.
  out = cnn_fe_forward(x, conv_params, fc_params, dropout_mask)
  out = jax.block_until_ready(out)
  assert out.shape == (B, out_dim), out.shape
  max_err = float(jnp.max(jnp.abs(out - ref)))
  assert max_err < 1e-3, f"f32 mismatch vs reference: {max_err}"

  # bf16 MXU-operand path (recommended on v6e / v7x); f32 accumulation keeps
  # the 6-layer chain close to the f32 reference.
  out_bf16 = cnn_fe_forward(x, conv_params, fc_params, dropout_mask,
                            operand_dtype=jnp.bfloat16)
  out_bf16 = jax.block_until_ready(out_bf16)
  rel = float(jnp.max(jnp.abs(out_bf16 - ref) / jnp.maximum(jnp.abs(ref), 1.0)))
  assert rel < 0.1, f"bf16 mismatch vs reference (rel): {rel}"

  print("KERNEL_OK")
</pallas_src>

<mosaic_0001>
module attributes {stable_mosaic.version = 11 : i64} {
  func.func @_cnn_fe_kernel(%arg0: i32, %arg1: memref<2x128xf32, #tpu.memory_space<vmem>>, %arg2: memref<128x256xf32, #tpu.memory_space<vmem>>, %arg3: memref<1x256xf32, #tpu.memory_space<vmem>>, %arg4: memref<256x128xf32, #tpu.memory_space<vmem>>, %arg5: memref<1x128xf32, #tpu.memory_space<vmem>>, %arg6: memref<128x64xf32, #tpu.memory_space<vmem>>, %arg7: memref<1x64xf32, #tpu.memory_space<vmem>>, %arg8: memref<64x32xf32, #tpu.memory_space<vmem>>, %arg9: memref<1x32xf32, #tpu.memory_space<vmem>>, %arg10: memref<32x16xf32, #tpu.memory_space<vmem>>, %arg11: memref<1x16xf32, #tpu.memory_space<vmem>>, %arg12: memref<16x8xf32, #tpu.memory_space<vmem>>, %arg13: memref<1x8xf32, #tpu.memory_space<vmem>>, %arg14: memref<8x8xf32, #tpu.memory_space<vmem>>, %arg15: memref<1x8xf32, #tpu.memory_space<vmem>>, %arg16: memref<2x8xf32, #tpu.memory_space<vmem>>, %arg17: memref<2x8xf32, #tpu.memory_space<vmem>>) attributes {dimension_semantics = [#tpu.dimension_semantics<parallel>], iteration_bounds = array<i64: 1>, scalar_prefetch = 0 : i64, scratch_operands = 0 : i64, tpu.core_type = #tpu.core_type<tc>, window_params = [{transform_indices = @transform_0, window_bounds = array<i64: 2, 128>}, {pipeline_mode = #tpu.pipeline_mode<synchronous>, transform_indices = @transform_1, window_bounds = array<i64: 128, 256>}, {pipeline_mode = #tpu.pipeline_mode<synchronous>, transform_indices = @transform_2, window_bounds = array<i64: 1, 256>}, {pipeline_mode = #tpu.pipeline_mode<synchronous>, transform_indices = @transform_3, window_bounds = array<i64: 256, 128>}, {pipeline_mode = #tpu.pipeline_mode<synchronous>, transform_indices = @transform_4, window_bounds = array<i64: 1, 128>}, {pipeline_mode = #tpu.pipeline_mode<synchronous>, transform_indices = @transform_5, window_bounds = array<i64: 128, 64>}, {pipeline_mode = #tpu.pipeline_mode<synchronous>, transform_indices = @transform_6, window_bounds = array<i64: 1, 64>}, {pipeline_mode = #tpu.pipeline_mode<synchronous>, transform_indices = @transform_7, window_bounds = array<i64: 64, 32>}, {pipeline_mode = #tpu.pipeline_mode<synchronous>, transform_indices = @transform_8, window_bounds = array<i64: 1, 32>}, {pipeline_mode = #tpu.pipeline_mode<synchronous>, transform_indices = @transform_9, window_bounds = array<i64: 32, 16>}, {pipeline_mode = #tpu.pipeline_mode<synchronous>, transform_indices = @transform_10, window_bounds = array<i64: 1, 16>}, {pipeline_mode = #tpu.pipeline_mode<synchronous>, transform_indices = @transform_11, window_bounds = array<i64: 16, 8>}, {pipeline_mode = #tpu.pipeline_mode<synchronous>, transform_indices = @transform_12, window_bounds = array<i64: 1, 8>}, {pipeline_mode = #tpu.pipeline_mode<synchronous>, transform_indices = @transform_13, window_bounds = array<i64: 8, 8>}, {pipeline_mode = #tpu.pipeline_mode<synchronous>, transform_indices = @transform_14, window_bounds = array<i64: 1, 8>}, {transform_indices = @transform_15, window_bounds = array<i64: 2, 8>}, {transform_indices = @transform_16, window_bounds = array<i64: 2, 8>}]} {
    %c0 = arith.constant 0 : index
    %c0_0 = arith.constant 0 : index
    %0 = vector.load %arg1[%c0, %c0_0] : memref<2x128xf32, #tpu.memory_space<vmem>>, vector<2x128xf32>
    %c0_1 = arith.constant 0 : index
    %c0_2 = arith.constant 0 : index
    %1 = vector.load %arg2[%c0_1, %c0_2] : memref<128x256xf32, #tpu.memory_space<vmem>>, vector<128x256xf32>
    %cst = arith.constant dense<0.000000e+00> : vector<2x256xf32>
    %2 = tpu.matmul %0, %1, %cst {dimension_numbers = #tpu.dot_dimension_numbers<[1], [0], [0], [1], [0, 0, 1, 1], [], []>} : vector<2x128xf32>, vector<128x256xf32>, vector<2x256xf32> -> vector<2x256xf32>
    %c0_3 = arith.constant 0 : index
    %c0_4 = arith.constant 0 : index
    %3 = vector.load %arg3[%c0_3, %c0_4] : memref<1x256xf32, #tpu.memory_space<vmem>>, vector<1x256xf32>
    %4 = vector.broadcast %3 : vector<1x256xf32> to vector<2x256xf32>
    %5 = arith.addf %2, %4 : vector<2x256xf32>
    %cst_5 = arith.constant 0.000000e+00 : f32
    %6 = vector.broadcast %cst_5 : f32 to vector<2x256xf32>
    %7 = arith.maximumf %5, %6 : vector<2x256xf32>
    %c0_6 = arith.constant 0 : index
    %c0_7 = arith.constant 0 : index
    %8 = vector.load %arg4[%c0_6, %c0_7] : memref<256x128xf32, #tpu.memory_space<vmem>>, vector<256x128xf32>
    %cst_8 = arith.constant dense<0.000000e+00> : vector<2x128xf32>
    %9 = tpu.matmul %7, %8, %cst_8 {dimension_numbers = #tpu.dot_dimension_numbers<[1], [0], [0], [1], [0, 0, 1, 1], [], []>} : vector<2x256xf32>, vector<256x128xf32>, vector<2x128xf32> -> vector<2x128xf32>
    %c0_9 = arith.constant 0 : index
    %c0_10 = arith.constant 0 : index
    %10 = vector.load %arg5[%c0_9, %c0_10] : memref<1x128xf32, #tpu.memory_space<vmem>>, vector<1x128xf32>
    %11 = vector.broadcast %10 : vector<1x128xf32> to vector<2x128xf32>
    %12 = arith.addf %9, %11 : vector<2x128xf32>
    %cst_11 = arith.constant 0.000000e+00 : f32
    %13 = vector.broadcast %cst_11 : f32 to vector<2x128xf32>
    %14 = arith.maximumf %12, %13 : vector<2x128xf32>
    %c0_12 = arith.constant 0 : index
    %c0_13 = arith.constant 0 : index
    %15 = vector.load %arg6[%c0_12, %c0_13] : memref<128x64xf32, #tpu.memory_space<vmem>>, vector<128x64xf32>
    %cst_14 = arith.constant dense<0.000000e+00> : vector<2x64xf32>
    %16 = tpu.matmul %14, %15, %cst_14 {dimension_numbers = #tpu.dot_dimension_numbers<[1], [0], [0], [1], [0, 0, 1, 1], [], []>} : vector<2x128xf32>, vector<128x64xf32>, vector<2x64xf32> -> vector<2x64xf32>
    %c0_15 = arith.constant 0 : index
    %c0_16 = arith.constant 0 : index
    %17 = vector.load %arg7[%c0_15, %c0_16] : memref<1x64xf32, #tpu.memory_space<vmem>>, vector<1x64xf32>
    %18 = vector.broadcast %17 : vector<1x64xf32> to vector<2x64xf32>
    %19 = arith.addf %16, %18 : vector<2x64xf32>
    %cst_17 = arith.constant 0.000000e+00 : f32
    %20 = vector.broadcast %cst_17 : f32 to vector<2x64xf32>
    %21 = arith.maximumf %19, %20 : vector<2x64xf32>
    %c0_18 = arith.constant 0 : index
    %c0_19 = arith.constant 0 : index
    %22 = vector.load %arg8[%c0_18, %c0_19] : memref<64x32xf32, #tpu.memory_space<vmem>>, vector<64x32xf32>
    %cst_20 = arith.constant dense<0.000000e+00> : vector<2x32xf32>
    %23 = tpu.matmul %21, %22, %cst_20 {dimension_numbers = #tpu.dot_dimension_numbers<[1], [0], [0], [1], [0, 0, 1, 1], [], []>} : vector<2x64xf32>, vector<64x32xf32>, vector<2x32xf32> -> vector<2x32xf32>
    %c0_21 = arith.constant 0 : index
    %c0_22 = arith.constant 0 : index
    %24 = vector.load %arg9[%c0_21, %c0_22] : memref<1x32xf32, #tpu.memory_space<vmem>>, vector<1x32xf32>
    %25 = vector.broadcast %24 : vector<1x32xf32> to vector<2x32xf32>
    %26 = arith.addf %23, %25 : vector<2x32xf32>
    %cst_23 = arith.constant 0.000000e+00 : f32
    %27 = vector.broadcast %cst_23 : f32 to vector<2x32xf32>
    %28 = arith.maximumf %26, %27 : vector<2x32xf32>
    %c0_24 = arith.constant 0 : index
    %c0_25 = arith.constant 0 : index
    %29 = vector.load %arg10[%c0_24, %c0_25] : memref<32x16xf32, #tpu.memory_space<vmem>>, vector<32x16xf32>
    %cst_26 = arith.constant dense<0.000000e+00> : vector<2x16xf32>
    %30 = tpu.matmul %28, %29, %cst_26 {dimension_numbers = #tpu.dot_dimension_numbers<[1], [0], [0], [1], [0, 0, 1, 1], [], []>} : vector<2x32xf32>, vector<32x16xf32>, vector<2x16xf32> -> vector<2x16xf32>
    %c0_27 = arith.constant 0 : index
    %c0_28 = arith.constant 0 : index
    %31 = vector.load %arg11[%c0_27, %c0_28] : memref<1x16xf32, #tpu.memory_space<vmem>>, vector<1x16xf32>
    %32 = vector.broadcast %31 : vector<1x16xf32> to vector<2x16xf32>
    %33 = arith.addf %30, %32 : vector<2x16xf32>
    %cst_29 = arith.constant 0.000000e+00 : f32
    %34 = vector.broadcast %cst_29 : f32 to vector<2x16xf32>
    %35 = arith.maximumf %33, %34 : vector<2x16xf32>
    %c0_30 = arith.constant 0 : index
    %c0_31 = arith.constant 0 : index
    %36 = vector.load %arg12[%c0_30, %c0_31] : memref<16x8xf32, #tpu.memory_space<vmem>>, vector<16x8xf32>
    %cst_32 = arith.constant dense<0.000000e+00> : vector<2x8xf32>
    %37 = tpu.matmul %35, %36, %cst_32 {dimension_numbers = #tpu.dot_dimension_numbers<[1], [0], [0], [1], [0, 0, 1, 1], [], []>} : vector<2x16xf32>, vector<16x8xf32>, vector<2x8xf32> -> vector<2x8xf32>
    %c0_33 = arith.constant 0 : index
    %c0_34 = arith.constant 0 : index
    %38 = vector.load %arg13[%c0_33, %c0_34] : memref<1x8xf32, #tpu.memory_space<vmem>>, vector<1x8xf32>
    %39 = vector.broadcast %38 : vector<1x8xf32> to vector<2x8xf32>
    %40 = arith.addf %37, %39 : vector<2x8xf32>
    %c0_35 = arith.constant 0 : index
    %c0_36 = arith.constant 0 : index
    %41 = vector.load %arg16[%c0_35, %c0_36] : memref<2x8xf32, #tpu.memory_space<vmem>>, vector<2x8xf32>
    %42 = arith.mulf %40, %41 : vector<2x8xf32>
    %c0_37 = arith.constant 0 : index
    %c0_38 = arith.constant 0 : index
    %43 = vector.load %arg14[%c0_37, %c0_38] : memref<8x8xf32, #tpu.memory_space<vmem>>, vector<8x8xf32>
    %cst_39 = arith.constant dense<0.000000e+00> : vector<2x8xf32>
    %44 = tpu.matmul %42, %43, %cst_39 {dimension_numbers = #tpu.dot_dimension_numbers<[1], [0], [0], [1], [0, 0, 1, 1], [], []>} : vector<2x8xf32>, vector<8x8xf32>, vector<2x8xf32> -> vector<2x8xf32>
    %c0_40 = arith.constant 0 : index
    %c0_41 = arith.constant 0 : index
    %45 = vector.load %arg15[%c0_40, %c0_41] : memref<1x8xf32, #tpu.memory_space<vmem>>, vector<1x8xf32>
    %46 = vector.broadcast %45 : vector<1x8xf32> to vector<2x8xf32>
    %47 = arith.addf %44, %46 : vector<2x8xf32>
    %c0_42 = arith.constant 0 : index
    %c0_43 = arith.constant 0 : index
    %48 = vector.load %arg17[%c0_42, %c0_43] : memref<2x8xf32, #tpu.memory_space<vmem>>, vector<2x8xf32>
    tpu.vector_store %arg17[%c0_42, %c0_43], %47 {strides = array<i32>} : memref<2x8xf32, #tpu.memory_space<vmem>>, vector<2x8xf32>,
    return
  }
  func.func @transform_0(%arg0: i32) -> (i32, i32) {
    %c0_i32 = arith.constant 0 : i32
    %c0_i32_0 = arith.constant 0 : i32
    return %arg0, %c0_i32 : i32, i32
  }
  func.func @transform_1(%arg0: i32) -> (i32, i32) {
    %c0_i32 = arith.constant 0 : i32
    %c0_i32_0 = arith.constant 0 : i32
    %c0_i32_1 = arith.constant 0 : i32
    return %c0_i32, %c0_i32_0 : i32, i32
  }
  func.func @transform_2(%arg0: i32) -> (i32, i32) {
    %c0_i32 = arith.constant 0 : i32
    %c0_i32_0 = arith.constant 0 : i32
    %c0_i32_1 = arith.constant 0 : i32
    return %c0_i32, %c0_i32_0 : i32, i32
  }
  func.func @transform_3(%arg0: i32) -> (i32, i32) {
    %c0_i32 = arith.constant 0 : i32
    %c0_i32_0 = arith.constant 0 : i32
    %c0_i32_1 = arith.constant 0 : i32
    return %c0_i32, %c0_i32_0 : i32, i32
  }
  func.func @transform_4(%arg0: i32) -> (i32, i32) {
    %c0_i32 = arith.constant 0 : i32
    %c0_i32_0 = arith.constant 0 : i32
    %c0_i32_1 = arith.constant 0 : i32
    return %c0_i32, %c0_i32_0 : i32, i32
  }
  func.func @transform_5(%arg0: i32) -> (i32, i32) {
    %c0_i32 = arith.constant 0 : i32
    %c0_i32_0 = arith.constant 0 : i32
    %c0_i32_1 = arith.constant 0 : i32
    return %c0_i32, %c0_i32_0 : i32, i32
  }
  func.func @transform_6(%arg0: i32) -> (i32, i32) {
    %c0_i32 = arith.constant 0 : i32
    %c0_i32_0 = arith.constant 0 : i32
    %c0_i32_1 = arith.constant 0 : i32
    return %c0_i32, %c0_i32_0 : i32, i32
  }
  func.func @transform_7(%arg0: i32) -> (i32, i32) {
    %c0_i32 = arith.constant 0 : i32
    %c0_i32_0 = arith.constant 0 : i32
    %c0_i32_1 = arith.constant 0 : i32
    return %c0_i32, %c0_i32_0 : i32, i32
  }
  func.func @transform_8(%arg0: i32) -> (i32, i32) {
    %c0_i32 = arith.constant 0 : i32
    %c0_i32_0 = arith.constant 0 : i32
    %c0_i32_1 = arith.constant 0 : i32
    return %c0_i32, %c0_i32_0 : i32, i32
  }
  func.func @transform_9(%arg0: i32) -> (i32, i32) {
    %c0_i32 = arith.constant 0 : i32
    %c0_i32_0 = arith.constant 0 : i32
    %c0_i32_1 = arith.constant 0 : i32
    return %c0_i32, %c0_i32_0 : i32, i32
  }
  func.func @transform_10(%arg0: i32) -> (i32, i32) {
    %c0_i32 = arith.constant 0 : i32
    %c0_i32_0 = arith.constant 0 : i32
    %c0_i32_1 = arith.constant 0 : i32
    return %c0_i32, %c0_i32_0 : i32, i32
  }
  func.func @transform_11(%arg0: i32) -> (i32, i32) {
    %c0_i32 = arith.constant 0 : i32
    %c0_i32_0 = arith.constant 0 : i32
    %c0_i32_1 = arith.constant 0 : i32
    return %c0_i32, %c0_i32_0 : i32, i32
  }
  func.func @transform_12(%arg0: i32) -> (i32, i32) {
    %c0_i32 = arith.constant 0 : i32
    %c0_i32_0 = arith.constant 0 : i32
    %c0_i32_1 = arith.constant 0 : i32
    return %c0_i32, %c0_i32_0 : i32, i32
  }
  func.func @transform_13(%arg0: i32) -> (i32, i32) {
    %c0_i32 = arith.constant 0 : i32
    %c0_i32_0 = arith.constant 0 : i32
    %c0_i32_1 = arith.constant 0 : i32
    return %c0_i32, %c0_i32_0 : i32, i32
  }
  func.func @transform_14(%arg0: i32) -> (i32, i32) {
    %c0_i32 = arith.constant 0 : i32
    %c0_i32_0 = arith.constant 0 : i32
    %c0_i32_1 = arith.constant 0 : i32
    return %c0_i32, %c0_i32_0 : i32, i32
  }
  func.func @transform_15(%arg0: i32) -> (i32, i32) {
    %c0_i32 = arith.constant 0 : i32
    %c0_i32_0 = arith.constant 0 : i32
    return %arg0, %c0_i32 : i32, i32
  }
  func.func @transform_16(%arg0: i32) -> (i32, i32) {
    %c0_i32 = arith.constant 0 : i32
    %c0_i32_0 = arith.constant 0 : i32
    return %arg0, %c0_i32 : i32, i32
  }
}

</mosaic_0001>

<bundles_post_ra>
// kernel: tpu_custom_call.1
= control target key start
LH: loop header
LB: loop body
LE: loop exit
PB: predicated region body
PF: predicated region fallthrough
CT: control target
= control target key end

     0   :  { %s1571_s0 = inlined_call_operand.vmem [shape: f32[2,128], index: 0, kind: input, shape index: {}]   ;;  %s1572_s1 = inlined_call_operand.vmem [shape: f32[128,256], index: 1, kind: input, shape index: {}]   ;;  %s1573_s2 = inlined_call_operand.hbm [shape: f32[1,256], index: 2, kind: input, shape index: {}]   ;;  %s1574_s3 = inlined_call_operand.hbm [shape: f32[256,128], index: 3, kind: input, shape index: {}]   ;;  %s1575_s4 = inlined_call_operand.hbm [shape: f32[1,128], index: 4, kind: input, shape index: {}]   ;;  %s1576_s5 = inlined_call_operand.vmem [shape: f32[128,64], index: 5, kind: input, shape index: {}]   ;;  %s1577_s6 = inlined_call_operand.hbm [shape: f32[1,64], index: 6, kind: input, shape index: {}]   ;;  %s1578_s7 = inlined_call_operand.vmem [shape: f32[64,32], index: 7, kind: input, shape index: {}]   ;;  %s1579_s8 = inlined_call_operand.vmem [shape: f32[1,32], index: 8, kind: input, shape index: {}]   ;;  %s1580_s9 = inlined_call_operand.vmem [shape: f32[32,16], index: 9, kind: input, shape index: {}]   ;;  %s1581_s10 = inlined_call_operand.vmem [shape: f32[1,16], index: 10, kind: input, shape index: {}]   ;;  %s1582_s11 = inlined_call_operand.vmem [shape: f32[16,8], index: 11, kind: input, shape index: {}]   ;;  %s1583_s12 = inlined_call_operand.vmem [shape: f32[1,8], index: 12, kind: input, shape index: {}]   ;;  %s1584_s13 = inlined_call_operand.vmem [shape: f32[8,8], index: 13, kind: input, shape index: {}]   ;;  %s1585_s14 = inlined_call_operand.vmem [shape: f32[1,8], index: 14, kind: input, shape index: {}]   ;;  %s1586_s15 = inlined_call_operand.vmem [shape: f32[2,8], index: 15, kind: input, shape index: {}]   ;;  %s1587_s16 = inlined_call_operand.hbm [shape: f32[2,8], index: 16, kind: output, shape index: {}]  }
   0x1   :  { %1589 = sst [smem:[#allocation15_spill]] %s1571_s0 }
   0x2   :  { %1590 = sst [smem:[#allocation16_spill]] %s1587_s16 }
   0x3   :  { %21 = vsyncpa [#allocation3], 0 }
   0x4   :  { %22 = vsyncpa [#allocation6], 0 }
   0x5   :  { %23 = vsyncpa [#allocation9], 0 }
   0x6   :  { %24 = vsyncpa [#allocation4], 0  ;;  %s1182_s21 = smov [#allocation5]   ;;  %s1064_s25 = scalar_lea.hbm %s1574_s3, 4096 }
   0x7   :  { %s44_s22 = sshll.u32 %s1182_s21, 4  ;;  %p1065_p0 = scmp.ne.s32.totalorder %s1574_s3, %s1064_s25  ;;  %s45_s22 = int_to_ptr.vmem [resolvable:$true] %s44_s22 }
   0x8   :  { %p1068_p1 = scmp.lt.u32.totalorder %s1064_s25, %s1574_s3 }
   0xa   :  { %p1070_p2 = pnand %p1068_p1, %p1065_p0 }
   0xc   :  { %1073 = shalt.err (!%p1070_p2)
}
   0xd   :  { %s1074_s30 = scalar_lea.vmem %s45_s22, 4096  ;;  %p1079_p4 = scmp.lt.s32.totalorder %s45_s22, %s45_s22 }
   0xe   :  { %p1075_p3 = scmp.ne.s32.totalorder %s45_s22, %s1074_s30  ;;  %p1080_p5 = scmp.lt.s32.totalorder %s1074_s30, %s1074_s30 }
  0x10   :  { %p1081_p6 = por %p1080_p5, %p1079_p4 }
  0x12   :  { %p1082_p7 = pnand %p1081_p6, %p1075_p3 }
  0x14   :  { %1085 = shalt.err (!%p1082_p7)
}
  0x15   :  { %s1183_s0 = smov 128   ;;  %s1184_s17 = smov 8  }
  0x16   :  { %50 = dma.hbm_to_vmem [thread:$0]  %s1574_s3, 4096, %s45_s22, [#allocation6], %s1183_s0, %s1183_s0, %s1184_s17  }
  0x17   :  { %s1185_s20 = smov [#allocation2]   ;;  %s1186_s23 = smov [#allocation7]  }
  0x18   :  { %s35_s21 = sshll.u32 %s1185_s20, 4  ;;  %s57_s24 = sshll.u32 %s1186_s23, 4  ;;  %s36_s21 = int_to_ptr.vmem [resolvable:$true] %s35_s21  ;;  %s58_s24 = int_to_ptr.vmem [resolvable:$true] %s57_s24 }
  0x19   :  { %s1086_s27 = scalar_lea.hbm %s1573_s2, 32 }
  0x1a   :  { %p1087_p8 = scmp.ne.s32.totalorder %s1573_s2, %s1086_s27  ;;  %p1090_p9 = scmp.lt.u32.totalorder %s1086_s27, %s1573_s2 }
  0x1c   :  { %p1092_p10 = pnand %p1090_p9, %p1087_p8 }
  0x1e   :  { %1095 = shalt.err (!%p1092_p10)
}
  0x1f   :  { %s1096_s3 = scalar_lea.vmem %s36_s21, 32  ;;  %p1101_p12 = scmp.lt.s32.totalorder %s36_s21, %s36_s21 }
  0x20   :  { %p1097_p11 = scmp.ne.s32.totalorder %s36_s21, %s1096_s3  ;;  %p1102_p13 = scmp.lt.s32.totalorder %s1096_s3, %s1096_s3 }
  0x22   :  { %p1103_p0 = por %p1102_p13, %p1101_p12 }
  0x24   :  { %p1104_p1 = pnand %p1103_p0, %p1097_p11 }
  0x26   :  { %1107 = shalt.err (!%p1104_p1)
}
  0x27   :  { %38 = dma.hbm_to_vmem [thread:$0]  %s1573_s2, 32, %s36_s21, [#allocation3]  }
  0x28   :  { %s1108_s19 = scalar_lea.hbm %s1575_s4, 16 }
  0x29   :  { %p1109_p2 = scmp.ne.s32.totalorder %s1575_s4, %s1108_s19  ;;  %p1112_p3 = scmp.lt.u32.totalorder %s1108_s19, %s1575_s4 }
  0x2b   :  { %p1114_p4 = pnand %p1112_p3, %p1109_p2 }
  0x2d   :  { %1117 = shalt.err (!%p1114_p4)
}
  0x2e   :  { %s1118_s26 = scalar_lea.vmem %s58_s24, 16  ;;  %s1122_s27 = scalar_lea.vmem %s58_s24, 32 }
  0x2f   :  { %p1119_p5 = scmp.ne.s32.totalorder %s58_s24, %s1118_s26  ;;  %p1123_p6 = scmp.lt.s32.totalorder %s58_s24, %s58_s24 }
  0x30   :  { %p1124_p7 = scmp.lt.s32.totalorder %s1122_s27, %s1118_s26 }
  0x32   :  { %p1125_p8 = por %p1124_p7, %p1123_p6 }
  0x34   :  { %p1126_p9 = pnand %p1125_p8, %p1119_p5 }
  0x36   :  { %1129 = shalt.err (!%p1126_p9)
}
  0x37   :  { %60 = dma.hbm_to_vmem [thread:$0]  %s1575_s4, 16, %s58_s24, [#allocation6]  }
  0x38   :  { %s1187_s28 = smov [#allocation8]   ;;  %s1130_s22 = scalar_lea.hbm %s1577_s6, 16 }
  0x39   :  { %s69_s29 = sshll.u32 %s1187_s28, 4  ;;  %p1131_p10 = scmp.ne.s32.totalorder %s1577_s6, %s1130_s22  ;;  %s70_s29 = int_to_ptr.vmem [resolvable:$true] %s69_s29 }
  0x3a   :  { %p1134_p11 = scmp.lt.u32.totalorder %s1130_s22, %s1577_s6 }
  0x3c   :  { %p1136_p12 = pnand %p1134_p11, %p1131_p10 }
  0x3e   :  { %1139 = shalt.err (!%p1136_p12)
}
  0x3f   :  { %s1140_s16 = scalar_lea.vmem %s70_s29, 16  ;;  %s1144_s4 = scalar_lea.vmem %s70_s29, 32 }
  0x40   :  { %p1141_p13 = scmp.ne.s32.totalorder %s70_s29, %s1140_s16  ;;  %p1145_p0 = scmp.lt.s32.totalorder %s70_s29, %s70_s29 }
  0x41   :  { %p1146_p1 = scmp.lt.s32.totalorder %s1144_s4, %s1140_s16 }
  0x43   :  { %p1147_p2 = por %p1146_p1, %p1145_p0 }
  0x45   :  { %p1148_p3 = pnand %p1147_p2, %p1141_p13 }
  0x47   :  { %1151 = shalt.err (!%p1148_p3)
}
  0x48   :  { %72 = dma.hbm_to_vmem [thread:$0]  %s1577_s6, 16, %s70_s29, [#allocation9]  }
  0x49   :  { %1174 = dma.done.wait [#allocation3], 32  }
  0x4a   :  { %1175 = vsyncadd [#allocation3], 4294967264 }
  0x4b   :  { %1176 = dma.done.wait [#allocation6], 4112  }
  0x4c   :  { %1177 = vsyncadd [#allocation6], 4294963184 }
  0x4d   :  { %1178 = dma.done.wait [#allocation9], 16  }
  0x4e   :  { %1179 = vsyncadd [#allocation9], 4294967280  ;;  %v1188_v0 = vmov 0.0   ;;  %v105_v1 = vld [vmem:[%s1572_s1 + $0x8] sm:$0xff]  ;;  %v107_v2 = vld [vmem:[%s1572_s1 + $0x18] sm:$0xff]  ;;  %s1591_s6 = sld [smem:[#allocation15_spill]] }
  0x4f   :  { %212 = vmatprep.mubr.f32.mxu0 %v1188_v0  ;;  %v104_v3 = vld [vmem:[%s1572_s1] sm:$0xff]  ;;  %v945_v4 = vpack.c.bf16 %v107_v2, %v105_v1  ;;  %v106_v5 = vld [vmem:[%s1572_s1 + $0x10] sm:$0xff]  ;;  %v109_v6 = vld [vmem:[%s1572_s1 + $0x28] sm:$0xff]  ;;  %vm1190_vm0 = vmmov 0   ;;  %vm440_vm1 = vcmask 523264   ;;  %vm526_vm2 = vcmask 261120  }
  0x50   :  { %v111_v7 = vld [vmem:[%s1572_s1 + $0x38] sm:$0xff]  ;;  %v947_v8 = vpack.c.bf16 %v106_v5, %v104_v3  ;;  %v108_v10 = vld [vmem:[%s1572_s1 + $0x20] sm:$0xff]  ;;  %v110_v11 = vld [vmem:[%s1572_s1 + $0x30] sm:$0xff]  ;;  %vm610_vm3 = vcmask 130048   ;;  %vm694_vm4 = vcmask 64512   ;;  %vm768_vm5 = vcmask 58368  }
  0x51   :  { %v949_v9 = vpack.c.bf16 %v111_v7, %v109_v6  ;;  %v113_v12 = vld [vmem:[%s1572_s1 + $0x48] sm:$0xff]  ;;  %946 = vmatprep.subr.bf16.mxu0 %v945_v4  ;;  %v115_v13 = vld [vmem:[%s1572_s1 + $0x58] sm:$0xff]  ;;  %v951_v14 = vpack.c.bf16 %v110_v11, %v108_v10  ;;  %v112_v16 = vld [vmem:[%s1572_s1 + $0x40] sm:$0xff] }
  0x52   :  { %948 = vmatpush1.bf16.msra.mxu0 %v947_v8  ;;  %v953_v15 = vpack.c.bf16 %v115_v13, %v113_v12  ;;  %v114_v17 = vld [vmem:[%s1572_s1 + $0x50] sm:$0xff]  ;;  %v117_v18 = vld [vmem:[%s1572_s1 + $0x68] sm:$0xff]  ;;  %v119_v19 = vld [vmem:[%s1572_s1 + $0x78] sm:$0xff] }
  0x53   :  { %950 = vmatprep.subr.bf16.mxu0 %v949_v9  ;;  %v955_v20 = vpack.c.bf16 %v114_v17, %v112_v16  ;;  %v957_v21 = vpack.c.bf16 %v119_v19, %v117_v18  ;;  %v116_v22 = vld [vmem:[%s1572_s1 + $0x60] sm:$0xff]  ;;  %v118_v23 = vld [vmem:[%s1572_s1 + $0x70] sm:$0xff]  ;;  %v121_v24 = vld [vmem:[%s1572_s1 + $0x88] sm:$0xff] }
  0x54   :  { %v123_v25 = vld [vmem:[%s1572_s1 + $0x98] sm:$0xff]  ;;  %v120_v26 = vld [vmem:[%s1572_s1 + $0x80] sm:$0xff]  ;;  %v122_v27 = vld [vmem:[%s1572_s1 + $0x90] sm:$0xff]  ;;  %v959_v31 = vpack.c.bf16 %v118_v23, %v116_v22 }
  0x55   :  { %v237_v28 = vld [vmem:[#allocation5 + $0x80] sm:$0xff]  ;;  %v238_v29 = vld [vmem:[#allocation5 + $0x88] sm:$0xff]  ;;  %v239_v34 = vld [vmem:[#allocation5 + $0x90] sm:$0xff]  ;;  %v961_v36 = vpack.c.bf16 %v123_v25, %v121_v24  ;;  %v963_v46 = vpack.c.bf16 %v122_v27, %v120_v26 }
  0x56   :  { %952 = vmatpush1.bf16.msra.mxu0 %v951_v14  ;;  %v221_v30 = vld [vmem:[#allocation5] sm:$0xff]  ;;  %v977_v32 = vpack.c.bf16 %v238_v29, %v237_v28  ;;  %v222_v33 = vld [vmem:[#allocation5 + $0x8] sm:$0xff]  ;;  %v240_v35 = vld [vmem:[#allocation5 + $0x98] sm:$0xff] }
  0x57   :  { %954 = vmatprep.subr.bf16.mxu0 %v953_v15  ;;  %v979_v37 = vpack.c.bf16 %v222_v33, %v221_v30  ;;  %v981_v38 = vpack.c.bf16 %v240_v35, %v239_v34  ;;  %v223_v39 = vld [vmem:[#allocation5 + $0x10] sm:$0xff]  ;;  %v224_v40 = vld [vmem:[#allocation5 + $0x18] sm:$0xff]  ;;  %v241_v41 = vld [vmem:[#allocation5 + $0xa0] sm:$0xff] }
  0x58   :  { %v125_v42 = vld [vmem:[%s1572_s1 + $0xa8] sm:$0xff]  ;;  %v127_v43 = vld [vmem:[%s1572_s1 + $0xb8] sm:$0xff]  ;;  %978 = vmatprep.subr.bf16.mxu1 %v977_v32  ;;  %v983_v45 = vpack.c.bf16 %v224_v40, %v223_v39  ;;  %v124_v47 = vld [vmem:[%s1572_s1 + $0xa0] sm:$0xff] }
  0x59   :  { %v242_v44 = vld [vmem:[#allocation5 + $0xa8] sm:$0xff]  ;;  %980 = vmatpush3.bf16.msra.mxu1 %v979_v37  ;;  %v225_v49 = vld [vmem:[#allocation5 + $0x20] sm:$0xff]  ;;  %v965_v51 = vpack.c.bf16 %v127_v43, %v125_v42  ;;  %v243_v53 = vld [vmem:[#allocation5 + $0xb0] sm:$0xff] }
  0x5a   :  { %956 = vmatpush1.bf16.msra.mxu0 %v955_v20  ;;  %982 = vmatprep.subr.bf16.mxu1 %v981_v38  ;;  %v985_v48 = vpack.c.bf16 %v242_v44, %v241_v41  ;;  %v226_v50 = vld [vmem:[#allocation5 + $0x28] sm:$0xff]  ;;  %v244_v54 = vld [vmem:[#allocation5 + $0xb8] sm:$0xff]  ;;  %v227_v61 = vld [vmem:[#allocation5 + $0x30] sm:$0xff]  ;;  %v1189_v38 = vmov 0.0|0.0  }
  0x5b   :  { %958 = vmatprep.subr.bf16.mxu0 %v957_v21  ;;  %v126_v52 = vld [vmem:[%s1572_s1 + $0xb0] sm:$0xff]  ;;  %v129_v55 = vld [vmem:[%s1572_s1 + $0xc8] sm:$0xff]  ;;  %v131_v56 = vld [vmem:[%s1572_s1 + $0xd8] sm:$0xff]  ;;  %v987_v57 = vpack.c.bf16 %v226_v50, %v225_v49  ;;  %v989_v60 = vpack.c.bf16 %v244_v54, %v243_v53  ;;  %v138_v54 = vlaneseq }
  0x5c   :  { %v967_v58 = vpack.c.bf16 %v126_v52, %v124_v47  ;;  %v128_v59 = vld [vmem:[%s1572_s1 + $0xc0] sm:$0xff]  ;;  %v969_v63 = vpack.c.bf16 %v131_v56, %v129_v55  ;;  %v130_v1 = vld [vmem:[%s1572_s1 + $0xd0] sm:$0xff]  ;;  %v133_v4 = vld [vmem:[%s1572_s1 + $0xe8] sm:$0xff] }
  0x5d   :  { %984 = vmatpush3.bf16.msra.mxu1 %v983_v45  ;;  %v228_v62 = vld [vmem:[#allocation5 + $0x38] sm:$0xff]  ;;  %v245_v2 = vld [vmem:[#allocation5 + $0xc0] sm:$0xff]  ;;  %v246_v3 = vld [vmem:[#allocation5 + $0xc8] sm:$0xff]  ;;  %v971_v7 = vpack.c.bf16 %v130_v1, %v128_v59  ;;  %v139_v55 = vshrl.u32 %v138_v54, 7 }
  0x5e   :  { %960 = vmatpush1.bf16.msra.mxu0 %v959_v31  ;;  %986 = vmatprep.subr.bf16.mxu1 %v985_v48  ;;  %v135_v5 = vld [vmem:[%s1572_s1 + $0xf8] sm:$0xff]  ;;  %v991_v6 = vpack.c.bf16 %v228_v62, %v227_v61  ;;  %v132_v8 = vld [vmem:[%s1572_s1 + $0xe0] sm:$0xff]  ;;  %v993_v9 = vpack.c.bf16 %v246_v3, %v245_v2  ;;  %v230_v11 = vld [vmem:[#allocation5 + $0x48] sm:$0xff] }
  0x5f   :  { %962 = vmatprep.subr.bf16.mxu0 %v961_v36  ;;  %v229_v10 = vld [vmem:[#allocation5 + $0x40] sm:$0xff]  ;;  %v973_v12 = vpack.c.bf16 %v135_v5, %v133_v4  ;;  %v134_v13 = vld [vmem:[%s1572_s1 + $0xf0] sm:$0xff]  ;;  %v248_v15 = vld [vmem:[#allocation5 + $0xd8] sm:$0xff]  ;;  %v140_v56 = vsub.s32 0, %v139_v55 }
  0x60   :  { %v247_v14 = vld [vmem:[#allocation5 + $0xd0] sm:$0xff]  ;;  %v995_v16 = vpack.c.bf16 %v230_v11, %v229_v10  ;;  %v975_v17 = vpack.c.bf16 %v134_v13, %v132_v8  ;;  %v232_v20 = vld [vmem:[#allocation5 + $0x58] sm:$0xff]  ;;  %v249_v21 = vld [vmem:[#allocation5 + $0xe0] sm:$0xff] }
  0x61   :  { %988 = vmatpush3.bf16.msra.mxu1 %v987_v57  ;;  %v997_v18 = vpack.c.bf16 %v248_v15, %v247_v14  ;;  %v231_v19 = vld [vmem:[#allocation5 + $0x50] sm:$0xff]  ;;  %v250_v22 = vld [vmem:[#allocation5 + $0xe8] sm:$0xff]  ;;  %v103_v24 = vld [vmem:[%s1591_s6] sm:$0x3] }
  0x62   :  { %964 = vmatpush1.bf16.msra.mxu0 %v963_v46  ;;  %990 = vmatprep.subr.bf16.mxu1 %v989_v60  ;;  %v999_v23 = vpack.c.bf16 %v232_v20, %v231_v19  ;;  %v1001_v25 = vpack.c.bf16 %v250_v22, %v249_v21  ;;  %v233_v26 = vld [vmem:[#allocation5 + $0x60] sm:$0xff]  ;;  %v234_v27 = vld [vmem:[#allocation5 + $0x68] sm:$0xff]  ;;  %v251_v29 = vld [vmem:[#allocation5 + $0xf0] sm:$0xff] }
  0x63   :  { %966 = vmatprep.subr.bf16.mxu0 %v965_v51  ;;  %v1003_v28 = vpack.c.bf16 %v234_v27, %v233_v26  ;;  %v252_v30 = vld [vmem:[#allocation5 + $0xf8] sm:$0xff]  ;;  %v235_v32 = vld [vmem:[#allocation5 + $0x70] sm:$0xff]  ;;  %v332_v36 = vld [vmem:[%s1576_s5 + $0x8] sm:$0xff] }
  0x64   :  { %v1005_v31 = vpack.c.bf16 %v252_v30, %v251_v29  ;;  %v236_v33 = vld [vmem:[#allocation5 + $0x78] sm:$0xff]  ;;  %v333_v37 = vld [vmem:[%s1576_s5 + $0x10] sm:$0xff]  ;;  %v336_v43 = vld [vmem:[%s1576_s5 + $0x28] sm:$0xff] }
  0x65   :  { %992 = vmatpush3.bf16.msra.mxu1 %v991_v6  ;;  %v1007_v34 = vpack.c.bf16 %v236_v33, %v235_v32  ;;  %v331_v35 = vld [vmem:[%s1576_s5] sm:$0xff]  ;;  %v334_v40 = vld [vmem:[%s1576_s5 + $0x18] sm:$0xff]  ;;  %v337_v45 = vld [vmem:[%s1576_s5 + $0x30] sm:$0xff] }
  0x66   :  { %968 = vmatpush1.bf16.msra.mxu0 %v967_v58  ;;  %994 = vmatprep.subr.bf16.mxu1 %v993_v9  ;;  %v1010_v39 = vpack.c.bf16 %v332_v36, %v331_v35  ;;  %v1013_v41 = vpack.c.bf16 %v334_v40, %v333_v37  ;;  %v335_v42 = vld [vmem:[%s1576_s5 + $0x20] sm:$0xff]  ;;  %v338_v46 = vld [vmem:[%s1576_s5 + $0x38] sm:$0xff]  ;;  %v340_v49 = vld [vmem:[%s1576_s5 + $0x48] sm:$0xff]  ;;  %v144_v58 = vsub.s32 1, %v139_v55 }
  0x67   :  { %970 = vmatprep.subr.bf16.mxu0 %v969_v63  ;;  %v1016_v44 = vpack.c.bf16 %v336_v43, %v335_v42  ;;  %v1019_v47 = vpack.c.bf16 %v338_v46, %v337_v45  ;;  %v339_v48 = vld [vmem:[%s1576_s5 + $0x40] sm:$0xff]  ;;  %v341_v51 = vld [vmem:[%s1576_s5 + $0x50] sm:$0xff]  ;;  %v342_v52 = vld [vmem:[%s1576_s5 + $0x58] sm:$0xff] }
  0x68   :  { %v1022_v50 = vpack.c.bf16 %v340_v49, %v339_v48  ;;  %v1025_v53 = vpack.c.bf16 %v342_v52, %v341_v51  ;;  %v136_v57 = vld [vmem:[#allocation2] sm:$0x3]  ;;  %v344_v5 = vld [vmem:[%s1576_s5 + $0x68] sm:$0xff]  ;;  %v346_v8 = vld [vmem:[%s1576_s5 + $0x78] sm:$0xff] }
  0x69   :  { %996 = vmatpush3.bf16.msra.mxu1 %v995_v16  ;;  %v141_v59 = vrot.slane %v136_v57, %v140_v56  ;;  %v145_v60 = vrot.slane %v136_v57, %v144_v58  ;;  %v343_v4 = vld [vmem:[%s1576_s5 + $0x60] sm:$0xff]  ;;  %v426_v11 = vld [vmem:[%s1578_s7 + $0x8] sm:$0xff]  ;;  %v428_v14 = vld [vmem:[%s1578_s7 + $0x18] sm:$0xff] }
  0x6a   :  { %972 = vmatpush1.bf16.msra.mxu0 %v971_v7  ;;  %998 = vmatprep.subr.bf16.mxu1 %v997_v18  ;;  %v1028_v6 = vpack.c.bf16 %v344_v5, %v343_v4  ;;  %v345_v7 = vld [vmem:[%s1576_s5 + $0x70] sm:$0xff]  ;;  %v425_v10 = vld [vmem:[%s1578_s7] sm:$0xff]  ;;  %v432_v26 = vld [vmem:[%s1578_s7 + $0x38] sm:$0xff] }
  0x6b   :  { %974 = vmatprep.subr.bf16.mxu0 %v973_v12  ;;  %v1031_v9 = vpack.c.bf16 %v346_v8, %v345_v7  ;;  %v427_v12 = vld [vmem:[%s1578_s7 + $0x10] sm:$0xff]  ;;  %v1034_v13 = vpack.c.bf16 %v426_v11, %v425_v10  ;;  %v429_v16 = vld [vmem:[%s1578_s7 + $0x20] sm:$0xff]  ;;  %v516_v30 = vld [vmem:[%s1580_s9 + $0x8] sm:$0xff] }
  0x6c   :  { %v1037_v15 = vpack.c.bf16 %v428_v14, %v427_v12  ;;  %v787_v20 = vld [vmem:[#allocation7] ss:$0 sm:$0xff]  ;;  %v517_v36 = vld [vmem:[%s1580_s9 + $0x10] sm:$0xff]  ;;  %v518_v37 = vld [vmem:[%s1580_s9 + $0x18] sm:$0xff] }
  0x6d   :  { %1000 = vmatpush3.bf16.msra.mxu1 %v999_v23  ;;  %v515_v29 = vld [vmem:[%s1580_s9] sm:$0xff] }
  0x6e   :  { %976 = vmatpush1.bf16.msra.mxu0 %v975_v17  ;;  %1002 = vmatprep.subr.bf16.mxu1 %v1001_v25  ;;  %v430_v17 = vld [vmem:[%s1578_s7 + $0x28] sm:$0xff]  ;;  %v431_v25 = vld [vmem:[%s1578_s7 + $0x30] sm:$0xff]  ;;  %v789_v40 = vld [vmem:[%s1579_s8] ss:$0 sm:$0xff] }
  0x6f   :  { %1009 = vmatprep.subr.bf16.mxu0 %v1189_v38  ;;  %v1040_v18 = vpack.c.bf16 %v430_v17, %v429_v16  ;;  %v1043_v27 = vpack.c.bf16 %v432_v26, %v431_v25  ;;  %v601_v45 = vld [vmem:[%s1582_s11] sm:$0xff] }
  0x70   :  { %v686_v52 = vld [vmem:[%s1584_s13] sm:$0xff]  ;;  %s1191_s13 = smov [#allocation10]  }
  0x71   :  { %213 = vmatmul.mubr.f32.vlgmr.msra.gmra.mrb[0].mxu0 %v103_v24  ;;  %1004 = vmatpush3.bf16.msra.mxu1 %v1003_v28  ;;  %v788_v28 = vld [vmem:[#allocation8] ss:$0 sm:$0xff]  ;;  %v684_v55 = vld [vmem:[%s1586_s15] sm:$0x3]  ;;  %s776_s29 = sshll.u32 %s1191_s13, 4  ;;  %s777_s29 = int_to_ptr.vmem [resolvable:$true] %s776_s29 }
  0x72   :  { %1006 = vmatprep.subr.bf16.mxu1 %v1005_v31  ;;  %1011 = vmatpush3.bf16.msra.mxu0 %v1010_v39  ;;  %v1049_v39 = vpack.c.bf16 %v518_v37, %v517_v36  ;;  %p1157_p5 = scmp.lt.s32.totalorder %s777_s29, %s777_s29 }
  0x73   :  { %1012 = vmatprep.subr.bf16.mxu0 %v1189_v38  ;;  %900 = vmatprep.mubr.msk.f32.mxu0 %vm1190_vm0, %v1188_v0 }
  0x75   :  { %1008 = vmatpush3.bf16.msra.mxu1 %v1007_v34  ;;  %v1046_v34 = vpack.c.bf16 %v516_v30, %v515_v29 }
  0x76   :  { %1033 = vmatprep.subr.bf16.mxu1 %v1189_v38  ;;  %1014 = vmatpush3.bf16.msra.mxu0 %v1013_v41 }
  0x77   :  { %1015 = vmatprep.subr.bf16.mxu0 %v1189_v38 }
  0x7a   :  { %1017 = vmatpush3.bf16.msra.mxu0 %v1016_v44 }
  0x7b   :  { %1018 = vmatprep.subr.bf16.mxu0 %v1189_v38 }
  0x7e   :  { %1020 = vmatpush3.bf16.msra.mxu0 %v1019_v47  ;;  %v791_v47 = vld [vmem:[%s1581_s10] ss:$0 sm:$0xff] }
  0x7f   :  { %1021 = vmatprep.subr.bf16.mxu0 %v1189_v38 }
  0x82   :  { %1023 = vmatpush3.bf16.msra.mxu0 %v1022_v50 }
  0x83   :  { %1024 = vmatprep.subr.bf16.mxu0 %v1189_v38 }
  0x86   :  { %1026 = vmatpush3.bf16.msra.mxu0 %v1025_v53  ;;  %v793_v53 = vld [vmem:[%s1583_s12] ss:$0 sm:$0xff]  ;;  %s1152_s12 = scalar_lea.vmem %s777_s29, 32 }
  0x87   :  { %1027 = vmatprep.subr.bf16.mxu0 %v1189_v38  ;;  %p1153_p4 = scmp.ne.s32.totalorder %s777_s29, %s1152_s12  ;;  %p1158_p6 = scmp.lt.s32.totalorder %s1152_s12, %s1152_s12 }
  0x89   :  { %p1159_p7 = por %p1158_p6, %p1157_p5 }
  0x8a   :  { %1029 = vmatpush3.bf16.msra.mxu0 %v1028_v6 }
  0x8b   :  { %1030 = vmatprep.subr.bf16.mxu0 %v1189_v38  ;;  %p1160_p8 = pnand %p1159_p7, %p1153_p4 }
  0x8e   :  { %1032 = vmatpush3.bf16.msra.mxu0 %v1031_v9 }
 0x144   :  { %v214_v61 = vpop.f32.mrb[0].mxu0 }
 0x145   :  { %v215_v62 = vadd.f32 %v214_v61, %v141_v59  ;;  %v216_v63 = vpop.f32.mrb[1].mxu0 }
 0x146   :  { %v217_v1 = vadd.f32 %v216_v63, %v145_v60 }
 0x147   :  { %v219_v3 = vmax.f32 %v215_v62, 0.0 }
 0x148   :  { %v220_v2 = vmax.f32 %v217_v1, 0.0 }
 0x14a   :  { %324 = vmatprep.mubr.f32.mxu1 %v220_v2 }
 0x14b   :  { %325 = vmatmul.mubr.f32.vlgmr.msra.gmra.mrb[0].mxu1 %v219_v3 }
 0x14c   :  { %919 = vmatprep.mubr.msk.f32.mxu1 %vm1190_vm0, %v1188_v0  ;;  %1035 = vmatpush3.bf16.msra.mxu1 %v1034_v13 }
 0x14d   :  { %1036 = vmatprep.subr.bf16.mxu1 %v1189_v38 }
 0x150   :  { %1038 = vmatpush3.bf16.msra.mxu1 %v1037_v15 }
 0x151   :  { %1039 = vmatprep.subr.bf16.mxu1 %v1189_v38 }
 0x154   :  { %1041 = vmatpush3.bf16.msra.mxu1 %v1040_v18 }
 0x155   :  { %1042 = vmatprep.subr.bf16.mxu1 %v1189_v38 }
 0x158   :  { %1044 = vmatpush3.bf16.msra.mxu1 %v1043_v27 }
 0x159   :  { %1045 = vmatprep.subr.bf16.mxu1 %v1189_v38 }
 0x21e   :  { %v829_v19 = vpop.f32.mrb[0].mxu1 }
 0x21f   :  { %v830_v21 = vpop.f32.mrb[1].mxu1 }
 0x220   :  { %v831_v22 = vadd.f32 %v830_v21, %v829_v19 }
 0x222   :  { %v327_v23 = vadd.f32 %v831_v22, %v787_v20 }
 0x224   :  { %v330_v24 = vmax.f32 %v327_v23, 0.0 }
 0x226   :  { %901 = vmatmul.mubr.f32.vlgmr.msra.gmra.mrb[2].mxu0 %v330_v24 }
 0x2f9   :  { %v420_v31 = vpop.f32.mrb[2].mxu0 }
 0x2fa   :  { %v421_v32 = vadd.f32 %v788_v28, %v420_v31  ;;  %v902_v33 = vpop.f32.mrb[3].mxu0 }
 0x2fc   :  { %v424_v35 = vmax.f32 %v421_v32, 0.0 }
 0x2fe   :  { %920 = vmatmul.mubr.msk.f32.vlgmr.msra.gmra.mrb[2].mxu1 %vm440_vm1, %v424_v35 }
 0x2ff   :  { %1047 = vmatpush3.bf16.msra.mxu1 %v1046_v34  ;;  %930 = vmatprep.mubr.msk.f32.mxu1 %vm1190_vm0, %v1188_v0 }
 0x300   :  { %1048 = vmatprep.subr.bf16.mxu1 %v1189_v38 }
 0x303   :  { %1050 = vmatpush3.bf16.msra.mxu1 %v1049_v39 }
 0x304   :  { %1051 = vmatprep.subr.bf16.mxu1 %v1189_v38  ;;  %v602_v38 = vld [vmem:[%s1582_s11 + $0x8] sm:$0xff] }
 0x305   :  { %v1052_v46 = vpack.c.bf16 %v602_v38, %v601_v45 }
 0x3d1   :  { %v510_v41 = vpop.f32.mrb[2].mxu1 }
 0x3d2   :  { %v511_v42 = vadd.f32 %v789_v40, %v510_v41  ;;  %v921_v43 = vpop.f32.mrb[3].mxu1 }
 0x3d4   :  { %v514_v44 = vmax.f32 %v511_v42, 0.0 }
 0x3d6   :  { %931 = vmatmul.mubr.msk.f32.vlgmr.msra.gmra.mrb[4].mxu1 %vm526_vm2, %v514_v44 }
 0x3d7   :  { %937 = vmatprep.mubr.msk.f32.mxu1 %vm1190_vm0, %v1188_v0  ;;  %1053 = vmatpush3.bf16.msra.mxu1 %v1052_v46 }
 0x3d8   :  { %940 = vmatprep.subr.mxu1 %v1188_v0 }
 0x4a9   :  { %v596_v48 = vpop.f32.mrb[4].mxu1 }
 0x4aa   :  { %v597_v49 = vadd.f32 %v791_v47, %v596_v48  ;;  %v932_v50 = vpop.f32.mrb[5].mxu1 }
 0x4ac   :  { %v600_v51 = vmax.f32 %v597_v49, 0.0 }
 0x4ae   :  { %938 = vmatmul.mubr.msk.f32.vlgmr.msra.gmra.mrb[6].mxu1 %vm610_vm3, %v600_v51 }
 0x4af   :  { %942 = vmatprep.mubr.msk.f32.mxu1 %vm1190_vm0, %v1188_v0  ;;  %941 = vmatpush3.msra.mxu1 %v686_v52  ;;  %v795_v0 = vld [vmem:[%s1585_s14] ss:$0 sm:$0xff] }
 0x581   :  { %v680_v54 = vpop.f32.mrb[6].mxu1 }
 0x582   :  { %v681_v56 = vadd.f32 %v793_v53, %v680_v54  ;;  %v939_v57 = vpop.f32.mrb[7].mxu1 }
 0x584   :  { %v685_v58 = vmul.f32 %v684_v55, %v681_v56 }
 0x586   :  { %943 = vmatmul.mubr.msk.f32.vlgmr.msra.gmra.mrb[8].mxu1 %vm694_vm4, %v685_v58 }
 0x659   :  { %v764_v59 = vpop.f32.mrb[8].mxu1 }
 0x65a   :  { %v765_v60 = vadd.f32 %v795_v0, %v764_v59  ;;  %v944_v61 = vpop.f32.mrb[9].mxu1 }
 0x65c   :  { %769 = vst.msk [vmem:[#allocation10] sm:$0x3] %vm768_vm5, %v765_v60 }
 0x65d   :  { %1163 = shalt.err (!%p1160_p8)
}
 0x65e   :  { %s1592_s3 = sld [smem:[#allocation16_spill]] }
 0x664   :  { %s1164_s22 = scalar_lea.hbm %s1592_s3, 32 }
 0x665   :  { %p1165_p9 = scmp.ne.s32.totalorder %s1592_s3, %s1164_s22  ;;  %p1168_p10 = scmp.lt.u32.totalorder %s1164_s22, %s1592_s3 }
 0x667   :  { %p1170_p11 = pnand %p1168_p10, %p1165_p9 }
 0x669   :  { %1173 = shalt.err (!%p1170_p11)
}
 0x66a   :  { %779 = dma.vmem_to_hbm [thread:$0]  %s777_s29, 32, %s1592_s3, [#allocation4]  }
 0x66b   :  { %1180 = dma.done.wait [#allocation4], 32  }
 0x66c   :  { %1181 = vsyncadd [#allocation4], 4294967264 }
 0x66d   :  { %783 = vsyncpa [#allocation3], 1 }
 0x66e   :  { %784 = vsyncpa [#allocation6], 1 }
 0x66f   :  { %785 = vsyncpa [#allocation9], 1 }
 0x670   :  { %786 = vsyncpa [#allocation4], 1 }

</bundles_post_ra>
